<compile_context>
chip_gen: v5e
topology: v5e:2x2
jax: 0.10.0
libtpu: 0.0.40
codegen_flags: <defaults>
</compile_context>

<pallas_src>
import math

import jax
import jax.numpy as jnp
from jax import lax
from jax.experimental import pallas as pl
from jax.experimental.pallas import tpu as pltpu


def _vmem_limit_bytes():
    """Generation-aware VMEM cap: ~3/4 of physical VMEM (48 MiB v7x, 96 MiB v5e/v6e)."""
    try:
        cap = pltpu.get_tpu_info().vmem_capacity_bytes
    except Exception:
        cap = 64 * 1024 * 1024            # unknown chip -> value that is safe everywhere
    return max(32 * 1024 * 1024, min(int(cap * 3 // 4), 100 * 1024 * 1024))


# Single-buffer the resident (constant-index) weight blocks so they do not pay the default
# 2x double-buffering VMEM cost.  Guarded so older jax without pipeline_mode still runs.
try:
    pl.BlockSpec((8, 128), lambda i: (0, 0), pipeline_mode=pl.Buffered(1))
    _RESIDENT = dict(pipeline_mode=pl.Buffered(1))
except Exception:  # pragma: no cover
    _RESIDENT = {}


def _layer_norm_f32(x, gamma, beta, eps=1e-5):
    mu = jnp.mean(x, axis=-1, keepdims=True)
    xc = x - mu
    var = jnp.mean(xc * xc, axis=-1, keepdims=True)
    return xc * lax.rsqrt(var + eps) * gamma + beta


# ---------------- kernel 1: per-(batch, head, q-tile) scaled dot attention ------------------

def _attention_kernel(xq_ref, xkv_ref, w_ref, b_ref, o_ref):
    # xq_ref : (1, tq, Din)   query rows of x for this (batch, q-tile)
    # xkv_ref: (1, S,  Din)   full sequence of x for this batch (K/V source)
    # w_ref  : (1, Din, 3*dk) this head's packed [Wq | Wk | Wv]
    # b_ref  : (1, 1, 3*dk)   this head's packed [bq | bk | bv]
    # o_ref  : (1, 1, tq, dk) this head's attention output rows
    f32 = jnp.float32
    dk = o_ref.shape[-1]

    xq = xq_ref[0]                       # (tq, Din), native dtype (f32 or bf16)
    xkv = xkv_ref[0]                     # (S, Din)
    w = w_ref[0]                         # (Din, 3*dk)
    b = b_ref[0].astype(f32)             # (1, 3*dk)

    q = (jnp.dot(xq, w[:, :dk], preferred_element_type=f32) + b[:, :dk]).astype(xq.dtype)
    k = (jnp.dot(xkv, w[:, dk:2 * dk], preferred_element_type=f32)
         + b[:, dk:2 * dk]).astype(xkv.dtype)
    v = (jnp.dot(xkv, w[:, 2 * dk:], preferred_element_type=f32)
         + b[:, 2 * dk:]).astype(xkv.dtype)

    # Scores: contract the last dims directly (no k.T -> no XLU transpose).
    s = lax.dot_general(q, k, (((1,), (1,)), ((), ())),
                        preferred_element_type=f32) * (1.0 / math.sqrt(dk))   # (tq, S)
    # TODO(synk): attention mask (scores += -1e9*mask) and probability dropout are not
    # implemented -- module is run with mask=None in eval mode.
    s_max = jnp.max(s, axis=-1, keepdims=True)
    p = jnp.exp(s - s_max)
    p = p * pl.reciprocal(jnp.sum(p, axis=-1, keepdims=True), approx=True)

    o = jnp.dot(p.astype(v.dtype), v, preferred_element_type=f32)             # (tq, dk)
    # TODO(synk): the dk-wide store is forced by the module's head-major torch.reshape
    # ((B,heads,S,dk)->(B,S,H)) semantics; a lane-dense (S,H) store would change the math.
    o_ref[0, 0] = o.astype(o_ref.dtype)


# ---------------- kernel 2: row-tiled post-attention (Wo + LN1 + FFN + LN2) -----------------

def _post_attn_kernel(attn_ref, x_ref, wo_ref, bo_ref, g1_ref, be1_ref,
                      w1_ref, b1_ref, w2_ref, b2_ref, g2_ref, be2_ref, o_ref):
    # attn_ref / x_ref: (TM, H) row tiles (pipelined); all other operands are resident.
    f32 = jnp.float32
    attn = attn_ref[...]

    # output projection + residual + LayerNorm1   (pre_dropout is identity in eval)
    proj = jnp.dot(attn, wo_ref[...], preferred_element_type=f32)
    resid1 = x_ref[...].astype(f32) + proj + bo_ref[...].astype(f32)
    a = _layer_norm_f32(resid1, g1_ref[...].astype(f32), be1_ref[...].astype(f32))

    # position-wise FFN (relu) + residual + LayerNorm2  (last_dropout is identity in eval)
    # TODO(synk): K-tile the W1/W2 matmuls over `inter` chunks if H*inter weights plus the
    # (TM, inter) intermediate ever exceed the VMEM budget (v7x with very large inter).
    a_in = a.astype(attn.dtype)
    h = jnp.dot(a_in, w1_ref[...], preferred_element_type=f32) + b1_ref[...].astype(f32)
    h = jnp.maximum(h, 0.0)
    ffn = jnp.dot(h.astype(w2_ref.dtype), w2_ref[...],
                  preferred_element_type=f32) + b2_ref[...].astype(f32)
    out = _layer_norm_f32(a + ffn, g2_ref[...].astype(f32), be2_ref[...].astype(f32))
    o_ref[...] = out.astype(o_ref.dtype)


# -------------------------------------- wrapper ---------------------------------------------

def transformer_encoder_layer(x, params, *, heads, q_tile=512, row_tile=512,
                              compute_dtype=None):
    """x: (batch, seq_len, hidden) -> (batch, seq_len, hidden). Standard path, eval mode.

    compute_dtype: optionally cast activations + matmul weights (e.g. jnp.bfloat16) so the
    MXU runs single-pass bf16; accumulation stays f32 and epilogues run in f32.
    """
    B, S, Din = x.shape
    H = params["wo"].shape[0]
    inter = params["w1"].shape[1]
    assert Din == H, "hidden_units must equal in_shape (module assert)"
    assert H % heads == 0
    dk = H // heads

    def cast(t):
        return t.astype(compute_dtype) if compute_dtype is not None else t

    x_c = cast(x)
    wqkv = cast(params["wqkv"])                   # (Din, 3H), columns = [q | k | v]
    wo, w1, w2 = cast(params["wo"]), cast(params["w1"]), cast(params["w2"])

    # Pre-pack QKV weights per head: (heads, Din, 3*dk) / (heads, 1, 3*dk).  One-time, tiny;
    # in a real deployment these would be stored pre-packed.
    w_heads = (wqkv.reshape(Din, 3, heads, dk).transpose(2, 0, 1, 3)
               .reshape(heads, Din, 3 * dk))
    b_heads = (params["bqkv"].reshape(3, heads, dk).transpose(1, 0, 2)
               .reshape(heads, 1, 3 * dk))

    vmem_limit = _vmem_limit_bytes()

    # ---- kernel 1: attention, grid (B, heads, q-tiles), all parallel ------------------------
    tq = S if S <= q_tile else q_tile             # tq == S (full dim) or a multiple of 8
    nq = pl.cdiv(S, tq)
    # TODO(synk): for very long S also tile K/V with a flash-style online-softmax accumulator
    # (KV axis 'arbitrary'); here the full-S K/V tile is kept per step.

    attn_heads = pl.pallas_call(
        _attention_kernel,
        out_shape=jax.ShapeDtypeStruct((B, heads, S, dk), x_c.dtype),
        grid=(B, heads, nq),
        in_specs=[
            pl.BlockSpec((1, tq, Din), lambda b, h, qi: (b, qi, 0)),     # Q rows (pipelined)
            pl.BlockSpec((1, S, Din), lambda b, h, qi: (b, 0, 0)),       # K/V rows (per batch)
            pl.BlockSpec((1, Din, 3 * dk), lambda b, h, qi: (h, 0, 0)),  # this head's weights
            pl.BlockSpec((1, 1, 3 * dk), lambda b, h, qi: (h, 0, 0)),    # this head's bias
        ],
        out_specs=pl.BlockSpec((1, 1, tq, dk), lambda b, h, qi: (b, h, qi, 0)),
        compiler_params=pltpu.CompilerParams(
            dimension_semantics=("parallel", "parallel", "parallel"),
            vmem_limit_bytes=vmem_limit),
    )(x_c, x_c, w_heads, b_heads)

    # Head-major reshape (B,heads,S,dk)->(B,S,H)->(B*S,H): replicates the module's
    # torch.reshape (row-major reflow, no transpose back); free (no copy) in XLA.
    attn2d = attn_heads.reshape(B * S, H)
    x2d = x_c.reshape(B * S, H)

    # ---- kernel 2: fused Wo-proj + LN1 + FFN + LN2 over row tiles ---------------------------
    m = B * S
    tm = m if m <= row_tile else row_tile         # tm == m (full dim) or a multiple of 8
    rows = lambda i: (i, 0)
    whole = lambda i: (0, 0)

    out2d = pl.pallas_call(
        _post_attn_kernel,
        out_shape=jax.ShapeDtypeStruct((m, H), x_c.dtype),
        grid=(pl.cdiv(m, tm),),
        in_specs=[
            pl.BlockSpec((tm, H), rows),                       # attention rows (pipelined)
            pl.BlockSpec((tm, H), rows),                       # residual input rows (pipelined)
            pl.BlockSpec((H, H), whole, **_RESIDENT),          # Wo (resident, single buffer)
            pl.BlockSpec((1, H), whole, **_RESIDENT),          # bo
            pl.BlockSpec((1, H), whole, **_RESIDENT),          # ln1 gamma
            pl.BlockSpec((1, H), whole, **_RESIDENT),          # ln1 beta
            pl.BlockSpec((H, inter), whole, **_RESIDENT),      # W1
            pl.BlockSpec((1, inter), whole, **_RESIDENT),      # b1
            pl.BlockSpec((inter, H), whole, **_RESIDENT),      # W2
            pl.BlockSpec((1, H), whole, **_RESIDENT),          # b2
            pl.BlockSpec((1, H), whole, **_RESIDENT),          # ln2 gamma
            pl.BlockSpec((1, H), whole, **_RESIDENT),          # ln2 beta
        ],
        out_specs=pl.BlockSpec((tm, H), rows),
        compiler_params=pltpu.CompilerParams(
            dimension_semantics=("parallel",),
            vmem_limit_bytes=vmem_limit),
    )(attn2d, x2d,
      wo, params["bo"].reshape(1, H),
      params["ln1_g"].reshape(1, H), params["ln1_b"].reshape(1, H),
      w1, params["b1"].reshape(1, inter),
      w2, params["b2"].reshape(1, H),
      params["ln2_g"].reshape(1, H), params["ln2_b"].reshape(1, H))

    return out2d.reshape(B, S, H)


# ------------------------------ params + plain-JAX reference --------------------------------

def init_params(key, in_shape, hidden_units, heads, intermediate_size, dtype=jnp.float32):
    assert hidden_units % heads == 0
    ks = jax.random.split(key, 12)

    def xavier(k, fan_in, fan_out):
        std = math.sqrt(2.0 / (fan_in + fan_out))
        return (jax.random.normal(k, (fan_in, fan_out), jnp.float32) * std).astype(dtype)

    def bias(k, fan_in, n):
        bound = 1.0 / math.sqrt(fan_in)
        return jax.random.uniform(k, (n,), jnp.float32, minval=-bound, maxval=bound).astype(dtype)

    wq = xavier(ks[0], in_shape, hidden_units)
    wk = xavier(ks[1], in_shape, hidden_units)
    wv = xavier(ks[2], in_shape, hidden_units)
    bq = bias(ks[3], in_shape, hidden_units)
    bk = bias(ks[4], in_shape, hidden_units)
    bv = bias(ks[5], in_shape, hidden_units)

    return dict(
        wqkv=jnp.concatenate([wq, wk, wv], axis=1),
        bqkv=jnp.concatenate([bq, bk, bv]),
        wo=xavier(ks[6], hidden_units, hidden_units),
        bo=bias(ks[7], hidden_units, hidden_units),
        ln1_g=jnp.ones((hidden_units,), dtype),
        ln1_b=jnp.zeros((hidden_units,), dtype),
        w1=xavier(ks[8], hidden_units, intermediate_size),
        b1=bias(ks[9], hidden_units, intermediate_size),
        w2=xavier(ks[10], intermediate_size, hidden_units),
        b2=bias(ks[11], intermediate_size, hidden_units),
        ln2_g=jnp.ones((hidden_units,), dtype),
        ln2_b=jnp.zeros((hidden_units,), dtype),
    )


def reference_forward(x, params, *, heads):
    """Plain-JAX forward with identical math (incl. the module's head-major reshape)."""
    B, S, H = x.shape
    dk = H // heads
    qkv = x @ params["wqkv"] + params["bqkv"]
    q, k, v = jnp.split(qkv, 3, axis=-1)

    def to_heads(t):
        return t.reshape(B, S, heads, dk).transpose(0, 2, 1, 3)        # (B, h, S, dk)

    qh, kh, vh = map(to_heads, (q, k, v))
    scores = jnp.einsum("bhqd,bhkd->bhqk", qh, kh) / math.sqrt(dk)
    probs = jax.nn.softmax(scores, axis=-1)
    attn = jnp.einsum("bhqk,bhkd->bhqd", probs, vh)                     # (B, h, S, dk)
    attn = attn.reshape(B, S, H)                                        # torch.reshape semantics
    attn_out = attn @ params["wo"] + params["bo"]

    a = _layer_norm_f32(x + attn_out, params["ln1_g"], params["ln1_b"])
    ffn = jnp.maximum(a @ params["w1"] + params["b1"], 0.0) @ params["w2"] + params["b2"]
    return _layer_norm_f32(a + ffn, params["ln2_g"], params["ln2_b"])


if __name__ == "__main__":
    batch, seq_len = 2, 8
    hidden_units, heads, intermediate_size = 32, 4, 64

    key = jax.random.PRNGKey(0)
    kx, kx2, kp = jax.random.split(key, 3)
    x = jax.random.normal(kx, (batch, seq_len, hidden_units), jnp.float32)
    params = init_params(kp, hidden_units, hidden_units, heads, intermediate_size)

    out = transformer_encoder_layer(x, params, heads=heads)
    out = jax.block_until_ready(out)

    ref = reference_forward(x, params, heads=heads)
    assert out.shape == (batch, seq_len, hidden_units)
    # MXU f32 matmuls may round through multi-pass bf16 and the softmax uses the EUP approx
    # reciprocal; tolerance covers that while still catching structural/layout errors (O(1)).
    assert jnp.allclose(out, ref, atol=2e-2, rtol=2e-2), float(jnp.max(jnp.abs(out - ref)))

    # Exercise the multi-tile paths (nq=2 query tiles, 2 row tiles, resident weights reused
    # across grid steps with single buffering) at a slightly longer sequence.
    x2 = jax.random.normal(kx2, (batch, 16, hidden_units), jnp.float32)
    out2 = transformer_encoder_layer(x2, params, heads=heads, q_tile=8, row_tile=16)
    out2 = jax.block_until_ready(out2)
    ref2 = reference_forward(x2, params, heads=heads)
    assert jnp.allclose(out2, ref2, atol=2e-2, rtol=2e-2), float(jnp.max(jnp.abs(out2 - ref2)))

    print("KERNEL_OK")
</pallas_src>

<mosaic_0001>
module attributes {stable_mosaic.version = 11 : i64} {
  func.func @_attention_kernel(%arg0: i32, %arg1: i32, %arg2: i32, %arg3: memref<1x8x32xf32, #tpu.memory_space<vmem>>, %arg4: memref<1x8x32xf32, #tpu.memory_space<vmem>>, %arg5: memref<1x32x24xf32, #tpu.memory_space<vmem>>, %arg6: memref<1x1x24xf32, #tpu.memory_space<vmem>>, %arg7: memref<1x1x8x8xf32, #tpu.memory_space<vmem>>) attributes {dimension_semantics = [#tpu.dimension_semantics<parallel>, #tpu.dimension_semantics<parallel>, #tpu.dimension_semantics<parallel>], iteration_bounds = array<i64: 2, 4, 1>, scalar_prefetch = 0 : i64, scratch_operands = 0 : i64, tpu.core_type = #tpu.core_type<tc>, window_params = [{transform_indices = @transform_0, window_bounds = array<i64: 1, 8, 32>}, {transform_indices = @transform_1, window_bounds = array<i64: 1, 8, 32>}, {transform_indices = @transform_2, window_bounds = array<i64: 1, 32, 24>}, {transform_indices = @transform_3, window_bounds = array<i64: 1, 1, 24>}, {transform_indices = @transform_4, window_bounds = array<i64: 1, 1, 8, 8>}]} {
    %c0 = arith.constant 0 : index
    %c0_0 = arith.constant 0 : index
    %c0_1 = arith.constant 0 : index
    %0 = vector.load %arg3[%c0, %c0_0, %c0_1] : memref<1x8x32xf32, #tpu.memory_space<vmem>>, vector<1x8x32xf32>
    %1 = vector.shape_cast %0 : vector<1x8x32xf32> to vector<8x32xf32>
    %c0_2 = arith.constant 0 : index
    %c0_3 = arith.constant 0 : index
    %c0_4 = arith.constant 0 : index
    %2 = vector.load %arg4[%c0_2, %c0_3, %c0_4] : memref<1x8x32xf32, #tpu.memory_space<vmem>>, vector<1x8x32xf32>
    %3 = vector.shape_cast %2 : vector<1x8x32xf32> to vector<8x32xf32>
    %c0_5 = arith.constant 0 : index
    %c0_6 = arith.constant 0 : index
    %c0_7 = arith.constant 0 : index
    %4 = vector.load %arg5[%c0_5, %c0_6, %c0_7] : memref<1x32x24xf32, #tpu.memory_space<vmem>>, vector<1x32x24xf32>
    %5 = vector.shape_cast %4 : vector<1x32x24xf32> to vector<32x24xf32>
    %c0_8 = arith.constant 0 : index
    %c0_9 = arith.constant 0 : index
    %c0_10 = arith.constant 0 : index
    %6 = vector.load %arg6[%c0_8, %c0_9, %c0_10] : memref<1x1x24xf32, #tpu.memory_space<vmem>>, vector<1x1x24xf32>
    %7 = vector.shape_cast %6 : vector<1x1x24xf32> to vector<1x24xf32>
    %8 = vector.extract_strided_slice %5 {offsets = [0, 0], sizes = [32, 8], strides = [1, 1]} : vector<32x24xf32> to vector<32x8xf32>
    %cst = arith.constant dense<0.000000e+00> : vector<8x8xf32>
    %9 = tpu.matmul %1, %8, %cst {dimension_numbers = #tpu.dot_dimension_numbers<[1], [0], [0], [1], [0, 0, 1, 1], [], []>} : vector<8x32xf32>, vector<32x8xf32>, vector<8x8xf32> -> vector<8x8xf32>
    %10 = vector.extract_strided_slice %7 {offsets = [0, 0], sizes = [1, 8], strides = [1, 1]} : vector<1x24xf32> to vector<1x8xf32>
    %11 = vector.broadcast %10 : vector<1x8xf32> to vector<8x8xf32>
    %12 = arith.addf %9, %11 : vector<8x8xf32>
    %13 = vector.extract_strided_slice %5 {offsets = [0, 8], sizes = [32, 8], strides = [1, 1]} : vector<32x24xf32> to vector<32x8xf32>
    %cst_11 = arith.constant dense<0.000000e+00> : vector<8x8xf32>
    %14 = tpu.matmul %3, %13, %cst_11 {dimension_numbers = #tpu.dot_dimension_numbers<[1], [0], [0], [1], [0, 0, 1, 1], [], []>} : vector<8x32xf32>, vector<32x8xf32>, vector<8x8xf32> -> vector<8x8xf32>
    %15 = vector.extract_strided_slice %7 {offsets = [0, 8], sizes = [1, 8], strides = [1, 1]} : vector<1x24xf32> to vector<1x8xf32>
    %16 = vector.broadcast %15 : vector<1x8xf32> to vector<8x8xf32>
    %17 = arith.addf %14, %16 : vector<8x8xf32>
    %18 = vector.extract_strided_slice %5 {offsets = [0, 16], sizes = [32, 8], strides = [1, 1]} : vector<32x24xf32> to vector<32x8xf32>
    %cst_12 = arith.constant dense<0.000000e+00> : vector<8x8xf32>
    %19 = tpu.matmul %3, %18, %cst_12 {dimension_numbers = #tpu.dot_dimension_numbers<[1], [0], [0], [1], [0, 0, 1, 1], [], []>} : vector<8x32xf32>, vector<32x8xf32>, vector<8x8xf32> -> vector<8x8xf32>
    %20 = vector.extract_strided_slice %7 {offsets = [0, 16], sizes = [1, 8], strides = [1, 1]} : vector<1x24xf32> to vector<1x8xf32>
    %21 = vector.broadcast %20 : vector<1x8xf32> to vector<8x8xf32>
    %22 = arith.addf %19, %21 : vector<8x8xf32>
    %cst_13 = arith.constant dense<0.000000e+00> : vector<8x8xf32>
    %23 = tpu.matmul %12, %17, %cst_13 {dimension_numbers = #tpu.dot_dimension_numbers<[1], [1], [0], [0], [0, 0, 1, 0], [], []>} : vector<8x8xf32>, vector<8x8xf32>, vector<8x8xf32> -> vector<8x8xf32>
    %cst_14 = arith.constant 0.353553385 : f32
    %24 = vector.broadcast %cst_14 : f32 to vector<8x8xf32>
    %25 = arith.mulf %23, %24 : vector<8x8xf32>
    %cst_15 = arith.constant dense<0xFF800000> : vector<8xf32>
    %26 = vector.multi_reduction <maximumf>, %25, %cst_15 [1] : vector<8x8xf32> to vector<8xf32>
    %27 = vector.shape_cast %26 : vector<8xf32> to vector<8x1xf32>
    %28 = vector.broadcast %27 : vector<8x1xf32> to vector<8x8xf32>
    %29 = arith.subf %25, %28 : vector<8x8xf32>
    %30 = math.exp %29 : vector<8x8xf32>
    %cst_16 = arith.constant dense<0.000000e+00> : vector<8xf32>
    %31 = vector.multi_reduction <add>, %30, %cst_16 [1] : vector<8x8xf32> to vector<8xf32>
    %32 = vector.shape_cast %31 : vector<8xf32> to vector<8x1xf32>
    %33 = tpu.reciprocal %32 {approx = true} : vector<8x1xf32> -> vector<8x1xf32>
    %34 = vector.broadcast %33 : vector<8x1xf32> to vector<8x8xf32>
    %35 = arith.mulf %30, %34 : vector<8x8xf32>
    %cst_17 = arith.constant dense<0.000000e+00> : vector<8x8xf32>
    %36 = tpu.matmul %35, %22, %cst_17 {dimension_numbers = #tpu.dot_dimension_numbers<[1], [0], [0], [1], [0, 0, 1, 1], [], []>} : vector<8x8xf32>, vector<8x8xf32>, vector<8x8xf32> -> vector<8x8xf32>
    %c0_18 = arith.constant 0 : index
    %c0_19 = arith.constant 0 : index
    %c0_20 = arith.constant 0 : index
    %c0_21 = arith.constant 0 : index
    %37 = vector.load %arg7[%c0_18, %c0_19, %c0_20, %c0_21] : memref<1x1x8x8xf32, #tpu.memory_space<vmem>>, vector<1x1x8x8xf32>
    %38 = vector.shape_cast %37 : vector<1x1x8x8xf32> to vector<8x8xf32>
    %39 = vector.shape_cast %36 : vector<8x8xf32> to vector<1x1x8x8xf32>
    tpu.vector_store %arg7[%c0_18, %c0_19, %c0_20, %c0_21], %39 {strides = array<i32>} : memref<1x1x8x8xf32, #tpu.memory_space<vmem>>, vector<1x1x8x8xf32>,
    return
  }
  func.func @transform_0(%arg0: i32, %arg1: i32, %arg2: i32) -> (i32, i32, i32) {
    %c0_i32 = arith.constant 0 : i32
    %c0_i32_0 = arith.constant 0 : i32
    return %arg0, %arg2, %c0_i32 : i32, i32, i32
  }
  func.func @transform_1(%arg0: i32, %arg1: i32, %arg2: i32) -> (i32, i32, i32) {
    %c0_i32 = arith.constant 0 : i32
    %c0_i32_0 = arith.constant 0 : i32
    %c0_i32_1 = arith.constant 0 : i32
    return %arg0, %c0_i32, %c0_i32_0 : i32, i32, i32
  }
  func.func @transform_2(%arg0: i32, %arg1: i32, %arg2: i32) -> (i32, i32, i32) {
    %c0_i32 = arith.constant 0 : i32
    %c0_i32_0 = arith.constant 0 : i32
    %c0_i32_1 = arith.constant 0 : i32
    return %arg1, %c0_i32, %c0_i32_0 : i32, i32, i32
  }
  func.func @transform_3(%arg0: i32, %arg1: i32, %arg2: i32) -> (i32, i32, i32) {
    %c0_i32 = arith.constant 0 : i32
    %c0_i32_0 = arith.constant 0 : i32
    %c0_i32_1 = arith.constant 0 : i32
    return %arg1, %c0_i32, %c0_i32_0 : i32, i32, i32
  }
  func.func @transform_4(%arg0: i32, %arg1: i32, %arg2: i32) -> (i32, i32, i32, i32) {
    %c0_i32 = arith.constant 0 : i32
    %c0_i32_0 = arith.constant 0 : i32
    return %arg0, %arg1, %arg2, %c0_i32 : i32, i32, i32, i32
  }
}

</mosaic_0001>

<bundles_post_ra>
// kernel: tpu_custom_call.1
= control target key start
LH: loop header
LB: loop body
LE: loop exit
PB: predicated region body
PF: predicated region fallthrough
CT: control target
= control target key end

     0   :  { %9 = vsyncpa [#allocation3], 0  ;;  %s966_s0 = inlined_call_operand.vmem [shape: f32[2,8,32], index: 0, kind: input, shape index: {}]   ;;  %s967_s1 = inlined_call_operand.vmem [shape: f32[2,8,32], index: 1, kind: input, shape index: {}]   ;;  %s968_s2 = inlined_call_operand.vmem [shape: f32[4,32,24], index: 2, kind: input, shape index: {}]   ;;  %s969_s3 = inlined_call_operand.vmem [shape: f32[4,1,24], index: 3, kind: input, shape index: {}]   ;;  %s970_s4 = inlined_call_operand.hbm [shape: f32[2,4,8,8], index: 4, kind: output, shape index: {}]  }
   0x1   :  { %11 = vsyncpa [#allocation3 + $0x1], 0  ;;  %s826_s15 = smov 0   ;;  %s828_s16 = smov 0  }
   0x2   :  { %s830_s17 = smov 0   ;;  %s832_s18 = smov 0  }
   0x3   :  { %s834_s19 = smov 0   ;;  %s836_s20 = smov 0  }
   0x4   :  { %s838_s21 = smov 0   ;;  %s840_s22 = smov 0  }
   0x5 LB: > { %s583_s23 = sadd.s32 4294967295, %s797_s22   ;;  %s584_s24 = sadd.s32 4294967294, %s797_s22   ;;  %s797_s22 = sphi %s840_s22, %s17_s22   ;;  %s793_s21 = sphi %s838_s21, %s979_s21   ;;  %s789_s20 = sphi %s836_s20, %s978_s20   ;;  %s785_s19 = sphi %s834_s19, %s977_s19   ;;  %s781_s18 = sphi %s832_s18, %s976_s18   ;;  %s777_s17 = sphi %s830_s17, %s975_s17   ;;  %s773_s16 = sphi %s828_s16, %s974_s16   ;;  %s769_s15 = sphi %s826_s15, %s973_s15  }
   0x6   : > { %s32_s25 = sadd.s32 1, %s789_s20  ;;  %s36_s26 = sadd.s32 1, %s793_s21 }
   0x7   : > { %p34_p0 = scmp.ge.s32.totalorder %s32_s25, 4  ;;  %p163_p1 = scmp.ne.s32.totalorder %s777_s17, %s773_s16 }
   0x8   : > { %p164_p2 = scmp.eq.s32.totalorder %s583_s23, 7  ;;  %p169_p5 = scmp.ne.s32.totalorder %s773_s16, %s769_s15 }
   0x9   : > { %s981_s25 = smov (%p34_p0, %s32_s25), 0  ;;  %s983_s26 = smov (!%p34_p0, %s36_s26), %s793_s21 }
   0xa   : > { %s147_s27 = ssub.s32 %s789_s20, %s981_s25  ;;  %p877_p3 = por %p164_p2, %p163_p1 }
   0xb   : > { %p38_p4 = scmp.ge.s32.totalorder %s983_s26, 2  ;;  %p170_p6 = scmp.eq.s32.totalorder %s584_s24, 7 }
   0xc   : > { %p587_p7 = scmp.ge.s32.totalorder %s797_s22, 1  ;;  %p219_p9 = scmp.lt.s32.totalorder %s797_s22, 9 }
   0xd   : > { %s985_s26 = smov (%p38_p4, %s983_s26), 0  ;;  %p886_p8 = por %p170_p6, %p169_p5 }
   0xe   : > { %s146_s30 = ssub.s32 %s793_s21, %s985_s26  ;;  %s153_s5 = sadd.s32 1, %s777_s17 }
   0xf   : > { %s148_s6 = sor.u32 %s147_s27, %s146_s30  ;;  %p220_p10 = pnand %p587_p7, %p219_p9 }
  0x10   : > { %p151_p11 = scmp.eq.s32.totalorder %s148_s6, 0  ;;  %p270_p12 = scmp.lt.s32.totalorder (!%p220_p10), %s781_s18, 3 }
  0x11   : > { %223 = sbr.rel (%p220_p10) target bundleno = 811 (0x32b), region = 36  ;;  %s799_s13 = smov (!%p220_p10), 120  }
  0x12   : > { %s895_s7 = scalar_select %p151_p11, %s777_s17, %s153_s5  }
  0x13   : > { %p259_p13 = scmp.lt.s32.totalorder (!%p220_p10), %s785_s19, 1  ;;  %s256_s14 = sand.u32 (!%p220_p10), 1, %s773_s16  }
  0x16   : > { %s271_s8 = scalar_select %p270_p12, %s781_s18, 3  ;;  %vm288_vm0 = vcmask 261120   ;;  %vm389_vm1 = vcmask 64512  }
  0x17   : > { %s260_s27 = scalar_select %p259_p13, %s785_s19, 1 }
  0x18   : > { %s604_s9 = sshll.u32 %s271_s8, 5  ;;  %s277_s24 = scalar_lea.vmem %s969_s3, %s271_s8 }
  0x19   : > { %s274_s12 = scalar_lea.vmem %s968_s2, %s604_s9  ;;  %s589_s30 = sshll.u32 %s260_s27, 3  ;;  %v698_v7 = vld [vmem:[%s277_s24] ss:$0 sm:$0xff] }
  0x1a   : > { %v282_v0 = vld [vmem:[%s274_s12 + $0x10] sm:$0xff]  ;;  %v283_v1 = vld [vmem:[%s274_s12 + $0x18] sm:$0xff]  ;;  %v280_v3 = vld [vmem:[%s274_s12] sm:$0xff]  ;;  %s265_s9 = scalar_lea.vmem %s966_s0, %s589_s30  ;;  %328 = vrot.lane.b32.xlu1 %v698_v7, %s799_s13  ;;  %s269_s11 = scalar_lea.vmem %s967_s1, %s589_s30 }
  0x1b   : > { %v678_v2 = vpack.i.bf16 %v282_v0, %v283_v1  ;;  %304 = vmatpush.msra.mxu0 %v283_v1  ;;  %v281_v4 = vld [vmem:[%s274_s12 + $0x8] sm:$0xff]  ;;  %v278_v6 = vld [vmem:[%s265_s9] sm:$0xff]  ;;  %s800_s12 = smov 112   ;;  %s588_s24 = sshll.u32 %s256_s14, 3 }
  0x1c   : > { %v683_v5 = vpack.i.bf16 %v280_v3, %v281_v4  ;;  %v279_v14 = vld [vmem:[%s269_s11] sm:$0xff]  ;;  %s258_s9 = scalar_lea.vmem [#allocation2], %s588_s24  ;;  %s453_s11 = scalar_lea.sflag [#allocation3], %s256_s14 }
  0x1d   : > { %679 = vrot.lane.b32.xlu0 %v678_v2, %s799_s13  ;;  %305 = vmatpush.msra.mxu0 %v282_v0  ;;  %s468_s8 = sshll.u32 %s258_s9, 4  ;;  %s469_s8 = int_to_ptr.vmem [resolvable:$true] %s468_s8 }
  0x1e   : > { %694 = vrot.lane.b32.xlu2 %v683_v5, %s800_s12 }
  0x1f   : > { %306 = vmatpush.msra.mxu0 %v281_v4 }
  0x21   : > { %307 = vmatpush.msra.mxu0 %v280_v3 }
  0x22   : > { %593 = vmatmul.msk.f32.vlgmr.msra.gmra.mxu0 %vm288_vm0, %v278_v6  ;;  %689 = vrot.lane.b32.xlu1 %v678_v2, %s800_s12 }
  0x25   : > { %684 = vrot.lane.b32.xlu0 %v683_v5, %s799_s13  ;;  %s600_s13 = sshll.u32 %s785_s19, 2 }
  0x26   : > { %s464_s23 = sadd.s32 %s781_s18, %s600_s13 }
  0x27   : > { %s601_s27 = sshll.u32 %s464_s23, 3  ;;  %s723_s23 = scalar_lea.hbm %s970_s4, 64 }
  0x28   : > { %s466_s6 = scalar_lea.hbm %s970_s4, %s601_s27 }
  0x29   : > { %s470_s10 = sshll.u32 %s466_s6, 4  ;;  %s471_s10 = int_to_ptr.hbm [resolvable:$true] %s470_s10 }
  0x2a   : > { %366 = vrot.lane.b32.xlu1 %v698_v7, %s800_s12  ;;  %s717_s12 = sshra.s32 %s471_s10, 4  ;;  %s718_s12 = int_to_ptr.hbm [resolvable:$true] %s717_s12 }
  0x2b   : > { %s719_s19 = scalar_lea.hbm %s718_s12, 8  ;;  %p724_p4 = scmp.lt.s32.totalorder %s718_s12, %s970_s4 }
  0x2c   : > { %p720_p0 = scmp.ne.s32.totalorder %s718_s12, %s719_s19  ;;  %p725_p5 = scmp.lt.s32.totalorder %s723_s23, %s719_s19 }
  0x2e   : > { %p721_p1 = pnand %p720_p0, %p877_p3  ;;  %p726_p6 = por %p725_p5, %p724_p4 }
  0x30   : > { %p722_p2 = pneg %p721_p1 }
  0x32   : > { %p727_p7 = pnand %p726_p6, %p722_p2 }
  0x78   : > { %v695_v21 = vpop.permute.xlu2 %694 }
  0x79   : > { %v696_v24 = vunpack.i.l.bf16 %v695_v21  ;;  %v697_v25 = vunpack.i.h.bf16 %v695_v21 }
  0x8c   : > { %v329_v15 = vpop.permute.xlu1 %328 }
  0x8f   : > { %v680_v8 = vpop.permute.xlu0 %679 }
  0x90   : > { %v681_v9 = vunpack.i.l.bf16 %v680_v8  ;;  %v682_v10 = vunpack.i.h.bf16 %v680_v8 }
  0x92   : > { %346 = vmatpush.msra.mxu1 %v681_v9 }
  0x94   : > { %347 = vmatpush.msra.mxu1 %v682_v10  ;;  %v690_v20 = vpop.permute.xlu1 %689 }
  0x95   : > { %v691_v22 = vunpack.i.l.bf16 %v690_v20  ;;  %v692_v23 = vunpack.i.h.bf16 %v690_v20 }
  0x97   : > { %v685_v11 = vpop.permute.xlu0 %684  ;;  %381 = vmatpush.msra.mxu2 %v691_v22 }
  0x98   : > { %v686_v12 = vunpack.i.l.bf16 %v685_v11  ;;  %v687_v13 = vunpack.i.h.bf16 %v685_v11 }
  0x99   : > { %382 = vmatpush.msra.mxu2 %v692_v23 }
  0x9a   : > { %348 = vmatpush.msra.mxu1 %v686_v12 }
  0x9b   : > { %383 = vmatpush.msra.mxu2 %v696_v24 }
  0x9c   : > { %349 = vmatpush.msra.mxu1 %v687_v13  ;;  %v367_v29 = vpop.permute.xlu1 %366 }
  0x9d   : > { %594 = vmatmul.msk.f32.vlgmr.msra.gmra.mxu1 %vm288_vm0, %v279_v14  ;;  %384 = vmatpush.msra.mxu2 %v697_v25 }
  0x9e   : > { %595 = vmatmul.msk.f32.vlgmr.msra.gmra.mxu2 %vm288_vm0, %v279_v14 }
  0x9f   : > { %v309_v16 = vpop.f32.mrf.mxu0 }
  0xa0   : > { %v310_v19 = vadd.f32 %v698_v7, %v309_v16 }
 0x11a   : > { %v351_v17 = vpop.f32.mrf.mxu1 }
 0x11b   : > { %v352_v18 = vadd.f32 %v351_v17, %v329_v15 }
 0x11d   : > { %596 = vmatpush.xpose.msk.msra.mxu3 %vm389_vm1, %v352_v18 }
 0x120   : > { %597 = vmatmul.msk.f32.vlgmr.msra.gmra.mxu3 %vm389_vm1, %v310_v19 }
 0x121   : > { %v386_v30 = vpop.f32.mrf.mxu2 }
 0x122   : > { %v387_v31 = vadd.f32 %v386_v30, %v367_v29 }
 0x124   : > { %446 = vmatpush.msrb.mxu3 %v387_v31 }
 0x1a3   : > { %v413_v26 = vpop.f32.mrf.mxu3 }
 0x1a4   : > { %v416_v27 = vmul.f32 0.35355338, %v413_v26 }
 0x1a6   : > { %v417_v28 = vsel %vm389_vm1, %v416_v27, -inf }
 0x1a7   : > { %418 = vmax.xlane.f32.xlu2 %v417_v28 }
 0x21a   : > { %v419_v32 = vpop.xlane.xlu2 %418 }
 0x21b   : > { %v420_v33 = vsub.f32 %v416_v27, %v419_v32 }
 0x21d   : > { %v421_v34 = vmul.f32 1.442695, %v420_v33 }
 0x21f   : > { %699 = vpow2.f32 %v421_v34 }
 0x225   : > { %v700_v35 = vpop.eup %699 }
 0x226   : > { %v423_v36 = vsel %vm389_vm1, %v700_v35, 0.0 }
 0x227   : > { %424 = vadd.xlane.f32.xlu0 %v423_v36 }
 0x29a   : > { %v425_v37 = vpop.xlane.xlu0 %424 }
 0x29b   : > { %701 = vrcp.f32 %v425_v37 }
 0x2a1   : > { %v702_v38 = vpop.eup %701 }
 0x2a2   : > { %v427_v39 = vmul.f32 %v702_v38, %v700_v35 }
 0x2a4   : > { %598 = vmatmul.msk.f32.vlgmr.msrb.gmra.mxu3 %vm389_vm1, %v427_v39 }
 0x327   : > { %v448_v40 = vpop.f32.mrf.mxu3 }
 0x328   : > { %451 = vst.msk [vmem:[%s258_s9] sm:$0xff] %vm389_vm1, %v448_v40 }
 0x329   : > { %730 = shalt.err (!%p727_p7)
}
 0x32a   : > { %605 = dma.vmem_to_hbm [thread:$0]  (%p877_p3), %s469_s8, 128, %s471_s10, %s453_s11  }
 0x32b PF: > { %p611_p9 = scmp.ge.s32.totalorder %s797_s22, 2  ;;  %s482_s14 = sand.u32 1, %s769_s15  }
 0x32c   : > { %s483_s30 = scalar_lea.sflag [#allocation3], %s482_s14 }
 0x32d   : > { %p608_p10 = pnand %p611_p9, %p886_p8 }
 0x32f   : > { %p609_p11 = pneg %p608_p10 }
 0x331   : > { %764 = dma.done.wait (%p609_p11), %s483_s30, 128  }
 0x332   : > { %766 = vsyncadd (%p609_p11), %s483_s30, 4294967168  ;;  %s17_s22 = sadd.s32 1, %s797_s22   ;;  %s973_s15 = smov %s773_s16 }
 0x333   : > { %p14_p12 = scmp.ge.s32.totalorder %s17_s22, 10   ;;  %s974_s16 = smov %s777_s17 }
 0x334   : > { %s975_s17 = smov %s895_s7  ;;  %s976_s18 = smov %s789_s20 }
 0x335   : > { %s977_s19 = smov %s793_s21  ;;  %s978_s20 = smov %s981_s25 }
 0x336   : > { %s979_s21 = smov %s985_s26  ;;  %16 = sbr.rel (!%p14_p12) target bundleno = 5 (0x5), region = 80 }
 0x33b   :  { %489 = vsyncpa [#allocation3], 1 }
 0x33c   :  { %491 = vsyncpa [#allocation3 + $0x1], 1 }

</bundles_post_ra>
